<compile_context>
chip_gen: v7x
topology: tpu7x:2x2x1
jax: 0.10.0
libtpu: 0.0.40
codegen_flags: <defaults>
</compile_context>

<pallas_src>
import jax
import jax.numpy as jnp
from jax import lax
from jax.experimental import pallas as pl
from jax.experimental.pallas import tpu as pltpu


_IGNORE_INDEX = -100          # nn.CrossEntropyLoss default ignore_index
_UNROLL_CLASS_LIMIT = 16      # fully unroll the class loops for small C
_FORI_UNROLL = 4              # modest unroll for the large-C fori_loop path


def _make_ce_argmax_kernel(num_classes, compute_dtype):
    C = num_classes

    def class_loop(start, body, init):
        # Small C: Python-unrolled (fastest).  Large C: bounded fori_loop so live
        # ranges / code size don't blow up vreg pressure.
        if C <= _UNROLL_CLASS_LIMIT:
            carry = init
            for c in range(start, C):
                carry = body(c, carry)
            return carry
        return lax.fori_loop(start, C, body, init, unroll=_FORI_UNROLL)

    def kernel(logits_ref, labels_ref, loss_ref, argmax_ref):
        # logits_ref: (C, TR, L)   labels_ref: (TR, L) int32
        # loss_ref:   (8, 128) f32 per-block partials   argmax_ref: (TR, L) int32
        lab = labels_ref[...]

        # ---- pass 1: running max + first-occurrence argmax (pure VPU) ----
        x0 = logits_ref[0].astype(compute_dtype)

        def max_body(c, carry):
            m, amax = carry
            xc = logits_ref[c].astype(compute_dtype)
            gt = xc > m                       # strict > keeps first occurrence (torch/jnp argmax)
            return jnp.maximum(m, xc), jnp.where(gt, c, amax)

        m, amax = class_loop(1, max_body, (x0, jnp.zeros(x0.shape, jnp.int32)))

        # ---- pass 2: sum(exp(x - m)) and x[label] gather ----
        def lse_body(c, carry):
            sexp, picked = carry
            xc = logits_ref[c].astype(compute_dtype)
            sexp = sexp + jnp.exp((xc - m).astype(jnp.float32))
            picked = jnp.where(lab == c, xc.astype(jnp.float32), picked)
            return sexp, picked

        zeros = jnp.zeros(x0.shape, jnp.float32)
        sexp, picked = class_loop(0, lse_body, (zeros, zeros))

        # nll = logsumexp(x) - x_label = (m + log(sum exp(x - m))) - x_label
        nll = m.astype(jnp.float32) + jnp.log(sexp) - picked
        valid = lab != _IGNORE_INDEX
        nll = jnp.where(valid, nll, 0.0)

        block_sum = jnp.sum(nll)
        block_cnt = jnp.sum(valid.astype(jnp.float32))

        # Pack the two per-block scalars into a lane-dense (8, 128) tile:
        #   [0, 0] = sum of per-pixel NLL,  [0, 1] = number of non-ignored pixels.
        row = lax.broadcasted_iota(jnp.int32, loss_ref.shape, 0)
        col = lax.broadcasted_iota(jnp.int32, loss_ref.shape, 1)
        vals = jnp.where(col == 0, block_sum, jnp.where(col == 1, block_cnt, 0.0))
        loss_ref[...] = jnp.where(row == 0, vals, 0.0)

        argmax_ref[...] = amax

    return kernel


def _pick_row_tile(R, n_batch, bytes_per_row, target_bytes=6 << 20, min_block_bytes=1 << 20):
    """Pick a row-tile TR (multiple-of-8 divisor of R) under the per-step VMEM budget,
    preferring tiles that keep the grid at >= 8 steps (>= 2 minimum) for pipelining and
    v7x dual-TensorCore sharding."""
    cands = [t for t in range(8, R + 1, 8) if R % t == 0]
    if not cands:
        # No multiple-of-8 divisor: a full-extent row block is the only legal tile shape.
        # TODO(synk): add a masked tail-tile path if such a block ever exceeds VMEM.
        return R
    fit = [t for t in cands if t * bytes_per_row <= target_bytes] or [min(cands)]
    fit.sort(reverse=True)
    # Prefer >= 8 total grid steps while keeping each block >= ~1 MiB (amortize ~0.35us/step).
    for t in fit:
        if n_batch * (R // t) >= 8 and t * bytes_per_row >= min_block_bytes:
            return t
    # Otherwise at least guarantee >= 2 grid steps when possible (pipelining / TC split).
    for t in fit:
        if n_batch * (R // t) >= 2:
            return t
    return fit[0]


def _chip_supports_bf16_vpu():
    # v6e / v7x have bf16 VPU+EUP; v5e (and older) do not -> keep f32 compute there.
    try:
        kind = jax.devices()[0].device_kind.lower()
    except Exception:
        return False
    return ("v6" in kind) or ("v7" in kind)


def loss_ce_forward(pred, label, ori=None):
    """Pallas equivalent of loss_CE.forward: returns (mean CE loss, argmax over dim 1)."""
    del ori  # unused by the PyTorch module as well
    N, C, H, W = pred.shape
    P = H * W
    labels = label.astype(jnp.int32)
    itemsize = jnp.dtype(pred.dtype).itemsize

    # Lane-dense view of the pixel axis: fold H*W into (rows, 128) so the last (lane) dim is
    # always a full 128 lanes.  This is a contiguous row-major reshape in the wrapper.
    if P % 128 == 0:
        lanes = 128
        R = P // lanes
        x = pred.reshape(N, C, R, lanes)
        lab2d = labels.reshape(N, R, lanes)
    else:
        lanes = W
        R = H
        x = pred
        lab2d = labels

    # Per-step bytes per row of pixels: C logits + int32 label + int32 argmax.
    bytes_per_row = lanes * (C * itemsize + 8)
    tr = _pick_row_tile(R, N, bytes_per_row)
    num_r = max(R // tr, 1)

    compute_dtype = (jnp.bfloat16
                     if (pred.dtype == jnp.bfloat16 and _chip_supports_bf16_vpu())
                     else jnp.float32)
    kernel = _make_ce_argmax_kernel(C, compute_dtype)

    loss_parts, y_flat = pl.pallas_call(
        kernel,
        out_shape=(
            jax.ShapeDtypeStruct((N, num_r * 8, 128), jnp.float32),  # per-block (sum, count)
            jax.ShapeDtypeStruct((N, R, lanes), jnp.int32),          # argmax over classes
        ),
        grid_spec=pltpu.PrefetchScalarGridSpec(
            num_scalar_prefetch=0,
            grid=(N, num_r),
            in_specs=[
                pl.BlockSpec((None, C, tr, lanes), lambda n, r: (n, 0, r, 0)),  # logits, NCHW kept
                pl.BlockSpec((None, tr, lanes), lambda n, r: (n, r, 0)),        # labels
            ],
            out_specs=(
                pl.BlockSpec((None, 8, 128), lambda n, r: (n, r, 0)),           # loss partials
                pl.BlockSpec((None, tr, lanes), lambda n, r: (n, r, 0)),        # argmax
            ),
        ),
        compiler_params=pltpu.CompilerParams(
            dimension_semantics=("parallel", "parallel"),
            vmem_limit_bytes=32 * 1024 * 1024,
        ),
    )(x, lab2d)

    parts = loss_parts.reshape(N, num_r, 8, 128)
    total = jnp.sum(parts[:, :, 0, 0])
    count = jnp.sum(parts[:, :, 0, 1])
    loss = total / count  # mean over non-ignored labels (CrossEntropyLoss default reduction)
    # TODO(synk): torch.argmax returns int64; values are identical but dtype here is int32.
    return loss, y_flat.reshape(N, H, W)


def _reference(pred, label):
    # pure-JAX reference for sanity checking (no ignored labels in the test inputs)
    logits = pred.astype(jnp.float32)
    logp = jax.nn.log_softmax(logits, axis=1)
    nll = -jnp.take_along_axis(logp, label[:, None, :, :].astype(jnp.int32), axis=1)
    return jnp.mean(nll), jnp.argmax(logits, axis=1).astype(jnp.int32)


if __name__ == "__main__":
    key = jax.random.PRNGKey(0)
    k1, k2 = jax.random.split(key)
    N, C, H, W = 2, 4, 16, 16
    pred = jax.random.normal(k1, (N, C, H, W), dtype=jnp.float32)
    label = jax.random.randint(k2, (N, H, W), 0, C, dtype=jnp.int32)
    ori = jnp.zeros_like(pred)  # unused, mirrors the torch signature

    loss, y_pred = loss_ce_forward(pred, label, ori)
    loss = jax.block_until_ready(loss)
    y_pred = jax.block_until_ready(y_pred)

    ref_loss, ref_pred = _reference(pred, label)
    assert jnp.allclose(loss, ref_loss, atol=1e-5, rtol=1e-5), (loss, ref_loss)
    assert jnp.array_equal(y_pred, ref_pred)

    print("KERNEL_OK")
</pallas_src>

<mosaic_0001>
module attributes {stable_mosaic.version = 11 : i64} {
  func.func @kernel(%arg0: i32, %arg1: i32, %arg2: memref<1x4x2x128xf32, #tpu.memory_space<vmem>>, %arg3: memref<1x2x128xi32, #tpu.memory_space<vmem>>, %arg4: memref<1x8x128xf32, #tpu.memory_space<vmem>>, %arg5: memref<1x2x128xi32, #tpu.memory_space<vmem>>) attributes {dimension_semantics = [#tpu.dimension_semantics<parallel>, #tpu.dimension_semantics<parallel>], iteration_bounds = array<i64: 2, 1>, scalar_prefetch = 0 : i64, scratch_operands = 0 : i64, tpu.core_type = #tpu.core_type<tc>, window_params = [{transform_indices = @transform_0, window_bounds = array<i64: 1, 4, 2, 128>}, {transform_indices = @transform_1, window_bounds = array<i64: 1, 2, 128>}, {transform_indices = @transform_2, window_bounds = array<i64: 1, 8, 128>}, {transform_indices = @transform_3, window_bounds = array<i64: 1, 2, 128>}]} {
    %c0 = arith.constant 0 : index
    %c0_0 = arith.constant 0 : index
    %c0_1 = arith.constant 0 : index
    %0 = vector.load %arg3[%c0, %c0_0, %c0_1] : memref<1x2x128xi32, #tpu.memory_space<vmem>>, vector<1x2x128xi32>
    %1 = vector.shape_cast %0 : vector<1x2x128xi32> to vector<2x128xi32>
    %c0_2 = arith.constant 0 : index
    %c0_3 = arith.constant 0 : index
    %c0_4 = arith.constant 0 : index
    %c0_5 = arith.constant 0 : index
    %2 = vector.load %arg2[%c0_2, %c0_3, %c0_4, %c0_5] : memref<1x4x2x128xf32, #tpu.memory_space<vmem>>, vector<1x1x2x128xf32>
    %3 = vector.shape_cast %2 : vector<1x1x2x128xf32> to vector<2x128xf32>
    %c0_i32 = arith.constant 0 : i32
    %4 = vector.broadcast %c0_i32 : i32 to vector<2x128xi32>
    %c0_6 = arith.constant 0 : index
    %c1 = arith.constant 1 : index
    %c0_7 = arith.constant 0 : index
    %c0_8 = arith.constant 0 : index
    %5 = vector.load %arg2[%c0_6, %c1, %c0_7, %c0_8] : memref<1x4x2x128xf32, #tpu.memory_space<vmem>>, vector<1x1x2x128xf32>
    %6 = vector.shape_cast %5 : vector<1x1x2x128xf32> to vector<2x128xf32>
    %7 = arith.cmpf ogt, %6, %3 : vector<2x128xf32>
    %8 = arith.maximumf %3, %6 : vector<2x128xf32>
    %c1_i32 = arith.constant 1 : i32
    %9 = vector.broadcast %c1_i32 : i32 to vector<2x128xi32>
    %10 = arith.select %7, %9, %4 : vector<2x128xi1>, vector<2x128xi32>
    %c0_9 = arith.constant 0 : index
    %c2 = arith.constant 2 : index
    %c0_10 = arith.constant 0 : index
    %c0_11 = arith.constant 0 : index
    %11 = vector.load %arg2[%c0_9, %c2, %c0_10, %c0_11] : memref<1x4x2x128xf32, #tpu.memory_space<vmem>>, vector<1x1x2x128xf32>
    %12 = vector.shape_cast %11 : vector<1x1x2x128xf32> to vector<2x128xf32>
    %13 = arith.cmpf ogt, %12, %8 : vector<2x128xf32>
    %14 = arith.maximumf %8, %12 : vector<2x128xf32>
    %c2_i32 = arith.constant 2 : i32
    %15 = vector.broadcast %c2_i32 : i32 to vector<2x128xi32>
    %16 = arith.select %13, %15, %10 : vector<2x128xi1>, vector<2x128xi32>
    %c0_12 = arith.constant 0 : index
    %c3 = arith.constant 3 : index
    %c0_13 = arith.constant 0 : index
    %c0_14 = arith.constant 0 : index
    %17 = vector.load %arg2[%c0_12, %c3, %c0_13, %c0_14] : memref<1x4x2x128xf32, #tpu.memory_space<vmem>>, vector<1x1x2x128xf32>
    %18 = vector.shape_cast %17 : vector<1x1x2x128xf32> to vector<2x128xf32>
    %19 = arith.cmpf ogt, %18, %14 : vector<2x128xf32>
    %20 = arith.maximumf %14, %18 : vector<2x128xf32>
    %c3_i32 = arith.constant 3 : i32
    %21 = vector.broadcast %c3_i32 : i32 to vector<2x128xi32>
    %22 = arith.select %19, %21, %16 : vector<2x128xi1>, vector<2x128xi32>
    %cst = arith.constant 0.000000e+00 : f32
    %23 = vector.broadcast %cst : f32 to vector<2x128xf32>
    %c0_15 = arith.constant 0 : index
    %c0_16 = arith.constant 0 : index
    %c0_17 = arith.constant 0 : index
    %c0_18 = arith.constant 0 : index
    %24 = vector.load %arg2[%c0_15, %c0_16, %c0_17, %c0_18] : memref<1x4x2x128xf32, #tpu.memory_space<vmem>>, vector<1x1x2x128xf32>
    %25 = vector.shape_cast %24 : vector<1x1x2x128xf32> to vector<2x128xf32>
    %26 = arith.subf %25, %20 : vector<2x128xf32>
    %27 = math.exp %26 : vector<2x128xf32>
    %28 = arith.addf %23, %27 : vector<2x128xf32>
    %c0_i32_19 = arith.constant 0 : i32
    %29 = vector.broadcast %c0_i32_19 : i32 to vector<2x128xi32>
    %30 = arith.cmpi eq, %1, %29 : vector<2x128xi32>
    %31 = arith.select %30, %25, %23 : vector<2x128xi1>, vector<2x128xf32>
    %c0_20 = arith.constant 0 : index
    %c1_21 = arith.constant 1 : index
    %c0_22 = arith.constant 0 : index
    %c0_23 = arith.constant 0 : index
    %32 = vector.load %arg2[%c0_20, %c1_21, %c0_22, %c0_23] : memref<1x4x2x128xf32, #tpu.memory_space<vmem>>, vector<1x1x2x128xf32>
    %33 = vector.shape_cast %32 : vector<1x1x2x128xf32> to vector<2x128xf32>
    %34 = arith.subf %33, %20 : vector<2x128xf32>
    %35 = math.exp %34 : vector<2x128xf32>
    %36 = arith.addf %28, %35 : vector<2x128xf32>
    %c1_i32_24 = arith.constant 1 : i32
    %37 = vector.broadcast %c1_i32_24 : i32 to vector<2x128xi32>
    %38 = arith.cmpi eq, %1, %37 : vector<2x128xi32>
    %39 = arith.select %38, %33, %31 : vector<2x128xi1>, vector<2x128xf32>
    %c0_25 = arith.constant 0 : index
    %c2_26 = arith.constant 2 : index
    %c0_27 = arith.constant 0 : index
    %c0_28 = arith.constant 0 : index
    %40 = vector.load %arg2[%c0_25, %c2_26, %c0_27, %c0_28] : memref<1x4x2x128xf32, #tpu.memory_space<vmem>>, vector<1x1x2x128xf32>
    %41 = vector.shape_cast %40 : vector<1x1x2x128xf32> to vector<2x128xf32>
    %42 = arith.subf %41, %20 : vector<2x128xf32>
    %43 = math.exp %42 : vector<2x128xf32>
    %44 = arith.addf %36, %43 : vector<2x128xf32>
    %c2_i32_29 = arith.constant 2 : i32
    %45 = vector.broadcast %c2_i32_29 : i32 to vector<2x128xi32>
    %46 = arith.cmpi eq, %1, %45 : vector<2x128xi32>
    %47 = arith.select %46, %41, %39 : vector<2x128xi1>, vector<2x128xf32>
    %c0_30 = arith.constant 0 : index
    %c3_31 = arith.constant 3 : index
    %c0_32 = arith.constant 0 : index
    %c0_33 = arith.constant 0 : index
    %48 = vector.load %arg2[%c0_30, %c3_31, %c0_32, %c0_33] : memref<1x4x2x128xf32, #tpu.memory_space<vmem>>, vector<1x1x2x128xf32>
    %49 = vector.shape_cast %48 : vector<1x1x2x128xf32> to vector<2x128xf32>
    %50 = arith.subf %49, %20 : vector<2x128xf32>
    %51 = math.exp %50 : vector<2x128xf32>
    %52 = arith.addf %44, %51 : vector<2x128xf32>
    %c3_i32_34 = arith.constant 3 : i32
    %53 = vector.broadcast %c3_i32_34 : i32 to vector<2x128xi32>
    %54 = arith.cmpi eq, %1, %53 : vector<2x128xi32>
    %55 = arith.select %54, %49, %47 : vector<2x128xi1>, vector<2x128xf32>
    %56 = math.log %52 : vector<2x128xf32>
    %57 = arith.addf %20, %56 : vector<2x128xf32>
    %58 = arith.subf %57, %55 : vector<2x128xf32>
    %c-100_i32 = arith.constant -100 : i32
    %59 = vector.broadcast %c-100_i32 : i32 to vector<2x128xi32>
    %60 = arith.cmpi ne, %1, %59 : vector<2x128xi32>
    %cst_35 = arith.constant 0.000000e+00 : f32
    %61 = vector.broadcast %cst_35 : f32 to vector<2x128xf32>
    %62 = arith.select %60, %58, %61 : vector<2x128xi1>, vector<2x128xf32>
    %63 = vector.shape_cast %62 : vector<2x128xf32> to vector<1x2x128xf32>
    %cst_36 = arith.constant dense<0.000000e+00> : vector<1xf32>
    %64 = vector.multi_reduction <add>, %63, %cst_36 [1, 2] : vector<1x2x128xf32> to vector<1xf32>
    %65 = vector.shape_cast %64 : vector<1xf32> to vector<1x1x1xf32>
    %66 = vector.extract %65[0, 0, 0] : f32 from vector<1x1x1xf32>
    %67 = arith.extui %60 : vector<2x128xi1> to vector<2x128xi32>
    %68 = arith.sitofp %67 : vector<2x128xi32> to vector<2x128xf32>
    %69 = vector.shape_cast %68 : vector<2x128xf32> to vector<1x2x128xf32>
    %cst_37 = arith.constant dense<0.000000e+00> : vector<1xf32>
    %70 = vector.multi_reduction <add>, %69, %cst_37 [1, 2] : vector<1x2x128xf32> to vector<1xf32>
    %71 = vector.shape_cast %70 : vector<1xf32> to vector<1x1x1xf32>
    %72 = vector.extract %71[0, 0, 0] : f32 from vector<1x1x1xf32>
    %73 = tpu.iota {dimensions = array<i32: 0>} : vector<8x128xi32>
    %74 = tpu.iota {dimensions = array<i32: 1>} : vector<8x128xi32>
    %c0_i32_38 = arith.constant 0 : i32
    %75 = vector.broadcast %c0_i32_38 : i32 to vector<8x128xi32>
    %76 = arith.cmpi eq, %74, %75 : vector<8x128xi32>
    %c1_i32_39 = arith.constant 1 : i32
    %77 = vector.broadcast %c1_i32_39 : i32 to vector<8x128xi32>
    %78 = arith.cmpi eq, %74, %77 : vector<8x128xi32>
    %cst_40 = arith.constant 0.000000e+00 : f32
    %79 = vector.broadcast %72 : f32 to vector<8x128xf32>
    %80 = vector.broadcast %cst_40 : f32 to vector<8x128xf32>
    %81 = arith.select %78, %79, %80 : vector<8x128xi1>, vector<8x128xf32>
    %82 = vector.broadcast %66 : f32 to vector<8x128xf32>
    %83 = arith.select %76, %82, %81 : vector<8x128xi1>, vector<8x128xf32>
    %c0_i32_41 = arith.constant 0 : i32
    %84 = vector.broadcast %c0_i32_41 : i32 to vector<8x128xi32>
    %85 = arith.cmpi eq, %73, %84 : vector<8x128xi32>
    %cst_42 = arith.constant 0.000000e+00 : f32
    %86 = vector.broadcast %cst_42 : f32 to vector<8x128xf32>
    %87 = arith.select %85, %83, %86 : vector<8x128xi1>, vector<8x128xf32>
    %c0_43 = arith.constant 0 : index
    %c0_44 = arith.constant 0 : index
    %c0_45 = arith.constant 0 : index
    %88 = vector.load %arg4[%c0_43, %c0_44, %c0_45] : memref<1x8x128xf32, #tpu.memory_space<vmem>>, vector<1x8x128xf32>
    %89 = vector.shape_cast %88 : vector<1x8x128xf32> to vector<8x128xf32>
    %90 = vector.shape_cast %87 : vector<8x128xf32> to vector<1x8x128xf32>
    tpu.vector_store %arg4[%c0_43, %c0_44, %c0_45], %90 {strides = array<i32>} : memref<1x8x128xf32, #tpu.memory_space<vmem>>, vector<1x8x128xf32>,
    %c0_46 = arith.constant 0 : index
    %c0_47 = arith.constant 0 : index
    %c0_48 = arith.constant 0 : index
    %91 = vector.load %arg5[%c0_46, %c0_47, %c0_48] : memref<1x2x128xi32, #tpu.memory_space<vmem>>, vector<1x2x128xi32>
    %92 = vector.shape_cast %91 : vector<1x2x128xi32> to vector<2x128xi32>
    %93 = vector.shape_cast %22 : vector<2x128xi32> to vector<1x2x128xi32>
    tpu.vector_store %arg5[%c0_46, %c0_47, %c0_48], %93 {strides = array<i32>} : memref<1x2x128xi32, #tpu.memory_space<vmem>>, vector<1x2x128xi32>,
    return
  }
  func.func @transform_0(%arg0: i32, %arg1: i32) -> (i32, i32, i32, i32) {
    %c0_i32 = arith.constant 0 : i32
    %c0_i32_0 = arith.constant 0 : i32
    %c0_i32_1 = arith.constant 0 : i32
    return %arg0, %c0_i32, %arg1, %c0_i32_0 : i32, i32, i32, i32
  }
  func.func @transform_1(%arg0: i32, %arg1: i32) -> (i32, i32, i32) {
    %c0_i32 = arith.constant 0 : i32
    %c0_i32_0 = arith.constant 0 : i32
    return %arg0, %arg1, %c0_i32 : i32, i32, i32
  }
  func.func @transform_2(%arg0: i32, %arg1: i32) -> (i32, i32, i32) {
    %c0_i32 = arith.constant 0 : i32
    %c0_i32_0 = arith.constant 0 : i32
    return %arg0, %arg1, %c0_i32 : i32, i32, i32
  }
  func.func @transform_3(%arg0: i32, %arg1: i32) -> (i32, i32, i32) {
    %c0_i32 = arith.constant 0 : i32
    %c0_i32_0 = arith.constant 0 : i32
    return %arg0, %arg1, %c0_i32 : i32, i32, i32
  }
}

</mosaic_0001>

<bundles_post_ra>
// kernel: tpu_custom_call.1
= control target key start
LH: loop header
LB: loop body
LE: loop exit
PB: predicated region body
PF: predicated region fallthrough
CT: control target
= control target key end

     0   :  { %9 = vsyncpa [#allocation3], 0  ;;  %s1085_s0 = inlined_call_operand.hbm [shape: f32[2,4,2,128], index: 0, kind: input, shape index: {}]   ;;  %s1086_s1 = inlined_call_operand.hbm [shape: s32[2,2,128], index: 1, kind: input, shape index: {}]   ;;  %s1087_s2 = inlined_call_operand.hbm [shape: f32[2,8,128], index: 2, kind: output, shape index: {0}]   ;;  %s1088_s3 = inlined_call_operand.hbm [shape: s32[2,2,128], index: 3, kind: output, shape index: {1}]  }
   0x1   :  { %11 = vsyncpa [#allocation3 + $0x1], 0 }
   0x2   :  { %12 = vsyncpa [#allocation6], 0 }
   0x3   :  { %14 = vsyncpa [#allocation6 + $0x1], 0 }
   0x4   :  { %15 = vsyncpa [#allocation4], 0 }
   0x5   :  { %17 = vsyncpa [#allocation4 + $0x1], 0 }
   0x6   :  { %18 = vsyncpa [#allocation9], 0 }
   0x7   :  { %20 = vsyncpa [#allocation9 + $0x1], 0  ;;  %s838_s12 = smov 0   ;;  %s840_s13 = smov 0  }
   0x8   :  { %s842_s14 = smov 0   ;;  %s844_s15 = smov 0  }
   0x9   :  { %s846_s16 = smov 0   ;;  %s848_s17 = smov 0  }
   0xa LB: > { %s515_s18 = sadd.s32 4294967295, %s808_s17   ;;  %s516_s19 = sadd.s32 4294967294, %s808_s17   ;;  %s808_s17 = sphi %s848_s17, %s26_s17   ;;  %s804_s16 = sphi %s846_s16, %s1107_s16   ;;  %s800_s15 = sphi %s844_s15, %s1106_s15   ;;  %s796_s14 = sphi %s842_s14, %s1105_s14   ;;  %s792_s13 = sphi %s840_s13, %s1104_s13   ;;  %s788_s12 = sphi %s838_s12, %s1103_s12  }
   0xb   : > { %s38_s20 = sadd.s32 1, %s804_s16  ;;  %s47_s21 = sadd.s32 1, %s796_s14 }
   0xc   : > { %p40_p0 = scmp.ge.s32.totalorder %s38_s20, 2  ;;  %p54_p1 = scmp.ne.s32.totalorder %s796_s14, %s792_s13 }
   0xd   : > { %p55_p2 = scmp.eq.s32.totalorder %s808_s17, 0  ;;  %p60_p3 = scmp.ne.s32.totalorder %s792_s13, %s788_s12 }
   0xe   : > { %s1109_s20 = smov (%p40_p0, %s38_s20), 0  ;;  %p61_p5 = scmp.eq.s32.totalorder %s515_s18, 0 }
   0xf   : > { %p879_p4 = por %p55_p2, %p54_p1  ;;  %s42_s23 = ssub.s32 %s804_s16, %s1109_s20 }
  0x10   : > { %p114_p6 = scmp.eq.s32.totalorder %s515_s18, 1  ;;  %p45_p7 = scmp.eq.s32.totalorder %s42_s23, 0 }
  0x11   : > { %p885_p8 = por %p61_p5, %p60_p3  ;;  %p120_p10 = scmp.eq.s32.totalorder %s516_s19, 1 }
  0x12   : > { %p889_p9 = por %p114_p6, %p54_p1  ;;  %p566_p13 = scmp.lt.s32.totalorder %s808_s17, 2 }
  0x13   : > { %s1092_s24 = scalar_select %p885_p8, 1, 0 }
  0x14   : > { %s1093_s25 = scalar_select %p889_p9, 1, 0 }
  0x15   : > { %s894_s26 = scalar_select %p45_p7, %s796_s14, %s47_s21  }
  0x16   : > { %p896_p11 = por %p120_p10, %p60_p3  ;;  %s903_s28 = sand.u32 1, %s796_s14  }
  0x17   : > { %s519_s29 = sshll.u32 %s903_s28, 3  ;;  %s539_s30 = sshll.u32 %s804_s16, 7 }
  0x18   : > { %s1094_s27 = scalar_select %p896_p11, 1, 0 }
  0x19   : > { %s910_s6 = scalar_lea.hbm %s1085_s0, %s539_s30  ;;  %s172_s7 = scalar_lea.vmem [#allocation2], %s519_s29 }
  0x1a   : > { %s180_s8 = sshll.u32 %s172_s7, 4  ;;  %p916_p0 = pnand %p566_p13, %p879_p4  ;;  %s912_s8 = int_to_ptr.vmem [resolvable:$true] %s180_s8 }
  0x1b   : > { %s169_s10 = scalar_lea.sflag [#allocation3], %s903_s28  ;;  %s630_s11 = scalar_lea.hbm %s910_s6, 128 }
  0x1c   : > { %p631_p2 = scmp.ne.s32.totalorder %s910_s6, %s630_s11  ;;  %p632_p3 = pneg %p916_p0 }
  0x1d   : > { %s635_s21 = scalar_lea.hbm %s1085_s0, 256  ;;  %p636_p4 = scmp.lt.u32.totalorder %s910_s6, %s1085_s0 }
  0x1e   : > { %p633_p5 = pnand %p632_p3, %p631_p2  ;;  %p637_p7 = scmp.lt.u32.totalorder %s635_s21, %s630_s11 }
  0x1f   : > { %p639_p13 = scmp.lt.u32.totalorder %s630_s11, %s910_s6 }
  0x20   : > { %p634_p6 = pneg %p633_p5  ;;  %p638_p10 = por %p637_p7, %p636_p4 }
  0x22   : > { %p640_p12 = por %p639_p13, %p638_p10 }
  0x24   : > { %p641_p1 = pnand %p640_p12, %p634_p6 }
  0x26   : > { %644 = shalt.err (!%p641_p1)
}
  0x27   : > { %s645_s29 = scalar_lea.vmem %s912_s8, 128  ;;  %s810_s30 = smov [#allocation2]  }
  0x28   : > { %p646_p2 = scmp.ne.s32.totalorder %s912_s8, %s645_s29  ;;  %s650_s4 = sshll.u32 %s810_s30, 4  ;;  %s651_s4 = int_to_ptr.vmem [resolvable:$false] %s650_s4 }
  0x29   : > { %s652_s5 = scalar_lea.vmem %s651_s4, 256  ;;  %p653_p9 = scmp.lt.s32.totalorder %s912_s8, %s651_s4 }
  0x2a   : > { %p648_p5 = pnand %p646_p2, %p632_p3  ;;  %p654_p4 = scmp.lt.s32.totalorder %s652_s5, %s645_s29 }
  0x2c   : > { %p649_p11 = pneg %p648_p5  ;;  %p655_p7 = por %p654_p4, %p653_p9 }
  0x2e   : > { %p656_p10 = pnand %p655_p7, %p649_p11 }
  0x30   : > { %659 = shalt.err (!%p656_p10)
}
  0x31   : > { %s811_s7 = smov 32   ;;  %s812_s11 = smov 2  }
  0x32   : > { %555 = dma.hbm_to_vmem [thread:$0]  (!%p916_p0), %s910_s6, 128, %s912_s8, %s169_s10, %s811_s7, %s811_s7, %s812_s11  }
  0x33   : > { %p207_p12 = scmp.lt.s32.totalorder %s808_s17, 3  ;;  %s522_s18 = sshll.u32 %s903_s28, 1 }
  0x34   : > { %s523_s19 = sshll.u32 %s804_s16, 5  ;;  %p1096_p9 = scmp.ge.s32.totalorder %s808_s17, 1 }
  0x35   : > { %s961_s29 = scalar_lea.hbm %s1086_s1, %s523_s19  ;;  %s194_s30 = scalar_lea.vmem [#allocation5], %s522_s18 }
  0x36   : > { %p954_p11 = pnand %p1096_p9, %p207_p12  ;;  %s202_s4 = sshll.u32 %s194_s30, 4  ;;  %s203_s4 = int_to_ptr.vmem [resolvable:$true] %s202_s4 }
  0x37   : > { %s191_s6 = scalar_lea.sflag [#allocation6], %s903_s28  ;;  %s660_s8 = scalar_lea.hbm %s961_s29, 32 }
  0x38   : > { %s1097_s21 = scalar_select %p954_p11, 1, 0 }
  0x39   : > { %p661_p1 = scmp.ne.s32.totalorder %s961_s29, %s660_s8  ;;  %s665_s7 = scalar_lea.hbm %s1086_s1, 64 }
  0x3a   : > { %p666_p2 = scmp.lt.u32.totalorder %s961_s29, %s1086_s1  ;;  %p667_p5 = scmp.lt.u32.totalorder %s665_s7, %s660_s8 }
  0x3b   : > { %p663_p6 = pnand %p661_p1, %p632_p3  ;;  %p669_p7 = scmp.lt.u32.totalorder %s660_s8, %s961_s29 }
  0x3c   : > { %p668_p4 = por %p667_p5, %p666_p2 }
  0x3d   : > { %p664_p13 = pneg %p663_p6 }
  0x3e   : > { %p670_p10 = por %p669_p7, %p668_p4 }
  0x40   : > { %p671_p12 = pnand %p670_p10, %p664_p13 }
  0x42   : > { %674 = shalt.err (!%p671_p12)
}
  0x43   : > { %s675_s28 = scalar_lea.vmem %s203_s4, 32  ;;  %s813_s18 = smov [#allocation5]  }
  0x44   : > { %p676_p9 = scmp.ne.s32.totalorder %s203_s4, %s675_s28  ;;  %s680_s22 = sshll.u32 %s813_s18, 4  ;;  %s681_s22 = int_to_ptr.vmem [resolvable:$false] %s680_s22 }
  0x45   : > { %s682_s23 = scalar_lea.vmem %s681_s22, 64  ;;  %p683_p8 = scmp.lt.s32.totalorder %s203_s4, %s681_s22 }
  0x46   : > { %p678_p1 = pnand %p676_p9, %p632_p3  ;;  %p684_p11 = scmp.lt.s32.totalorder %s682_s23, %s675_s28 }
  0x48   : > { %p679_p6 = pneg %p678_p1  ;;  %p685_p2 = por %p684_p11, %p683_p8 }
  0x4a   : > { %p686_p5 = pnand %p685_p2, %p679_p6 }
  0x4c   : > { %689 = shalt.err (!%p686_p5)
}
  0x4d   : > { %558 = dma.hbm_to_vmem [thread:$0]  (!%p916_p0), %s961_s29, 32, %s203_s4, %s191_s6  }
  0x4e   : > { %p1098_p13 = scmp.ne.s32.totalorder %s1097_s21, 0 }
  0x4f   : > { %s986_s30 = sand.u32 (!%p1098_p13), 1, %s792_s13   ;;  %p1099_p8 = scmp.ne.s32.totalorder (!%p1098_p13), %s1092_s24, 0 }
  0x50   : > { %211 = sbr.rel (%p1098_p13) target bundleno = 365 (0x16d), region = 28  ;;  %s525_s8 = sshll.u32 (!%p1098_p13), %s986_s30, 3 }
  0x51   : > { %s214_s10 = scalar_lea.sflag (!%p1098_p13), [#allocation3], %s986_s30  ;;  %s217_s5 = scalar_lea.vmem (!%p1098_p13), [#allocation2], %s525_s8 }
  0x57   : > { %771 = dma.done.wait (%p1099_p8), %s214_s10, 128  }
  0x58   : > { %773 = vsyncadd (%p1099_p8), %s214_s10, 4294967168  ;;  %s526_s9 = sshll.u32 %s986_s30, 1  ;;  %s223_s21 = scalar_lea.sflag [#allocation6], %s986_s30 }
  0x59   : > { %s226_s29 = scalar_lea.vmem [#allocation5], %s526_s9 }
  0x5a   : > { %775 = dma.done.wait (%p1099_p8), %s223_s21, 32  }
  0x5b   : > { %777 = vsyncadd (%p1099_p8), %s223_s21, 4294967264  ;;  %v260_v0 = vld [vmem:[%s217_s5] sm:$0x3]  ;;  %v529_v1 = vld [vmem:[%s217_s5 + $0x2] sm:$0x3]  ;;  %vm306_vm5 = vcmask 1041408  }
  0x5c   : > { %v264_v2 = vmax.f32 %v260_v0, %v529_v1  ;;  %v530_v3 = vld [vmem:[%s217_s5 + $0x4] sm:$0x3]  ;;  %v531_v4 = vld [vmem:[%s217_s5 + $0x6] sm:$0x3]  ;;  %v259_v21 = vld [vmem:[%s226_s29] sm:$0x3]  ;;  %vm263_vm6 = vcmp.gt.f32.partialorder %v529_v1, %v260_v0 }
  0x5d   : > { %vm280_vm0 = vcmp.eq.s32.totalorder %v259_v21, 0  ;;  %vm286_vm1 = vcmp.eq.s32.totalorder %v259_v21, 1  ;;  %vm292_vm2 = vcmp.eq.s32.totalorder %v259_v21, 2  ;;  %vm298_vm3 = vcmp.eq.s32.totalorder %v259_v21, 3  ;;  %s258_s24 = scalar_lea.vmem [#allocation8], %s526_s9  ;;  %s536_s4 = sshll.u32 %s800_s15, 5 }
  0x5e   : > { %v269_v5 = vmax.f32 %v264_v2, %v530_v3  ;;  %v281_v23 = vsel %vm280_vm0, %v260_v0, 0.0  ;;  %vm304_vm4 = vcmp.ne.s32.totalorder %v259_v21, 4294967196  ;;  %v814_v32 = vmov 0.0   ;;  %s377_s6 = sshll.u32 %s258_s24, 4  ;;  %s1010_s19 = scalar_lea.hbm %s1088_s3, %s536_s4  ;;  %s378_s6 = int_to_ptr.vmem [resolvable:$true] %s377_s6 }
  0x5f   : > { %v287_v24 = vsel %vm286_vm1, %v529_v1, %v281_v23  ;;  %v532_v33 = vsel %vm304_vm4, 1.0, %v814_v32  ;;  %v815_v36 = vmov 0   ;;  %vm268_vm7 = vcmp.gt.f32.partialorder %v530_v3, %v264_v2  ;;  %s349_s28 = scalar_lea.sflag [#allocation9], %s986_s30  ;;  %s690_s18 = scalar_lea.vmem %s378_s6, 32 }
  0x60   : > { %v274_v6 = vmax.f32 %v269_v5, %v531_v4  ;;  %v293_v25 = vsel %vm292_vm2, %v530_v3, %v287_v24  ;;  %v319_v35 = vsel %vm306_vm5, %v532_v33, 0.0  ;;  %v265_v37 = vsel %vm263_vm6, 1, %v815_v36  ;;  %p691_p0 = scmp.ne.s32.totalorder %s378_s6, %s690_s18  ;;  %p1100_p3 = scmp.ne.s32.totalorder %s1093_s25, 0 }
  0x61   : > { %v299_v28 = vsel %vm298_vm3, %v531_v4, %v293_v25  ;;  %v270_v38 = vsel %vm268_vm7, 2, %v265_v37  ;;  %vm273_vm8 = vcmp.gt.f32.partialorder %v531_v4, %v269_v5  ;;  %s816_s22 = smov [#allocation8]  }
  0x62   : > { %v276_v7 = vsub.f32 %v260_v0, %v274_v6  ;;  %v282_v8 = vsub.f32 %v529_v1, %v274_v6  ;;  %v288_v9 = vsub.f32 %v530_v3, %v274_v6  ;;  %v294_v10 = vsub.f32 %v531_v4, %v274_v6  ;;  %p692_p11 = pnand %p691_p0, %p1100_p3  ;;  %s694_s23 = sshll.u32 %s816_s22, 4  ;;  %s695_s23 = int_to_ptr.vmem [resolvable:$false] %s694_s23 }
  0x63   : > { %v275_v39 = vsel %vm273_vm8, 3, %v270_v38  ;;  %s696_s10 = scalar_lea.vmem %s695_s23, 64  ;;  %p697_p7 = scmp.lt.s32.totalorder %s378_s6, %s695_s23 }
  0x64   : > { %v277_v11 = vmul.f32 1.442695, %v276_v7  ;;  %v283_v12 = vmul.f32 1.442695, %v282_v8  ;;  %v289_v13 = vmul.f32 1.442695, %v288_v9  ;;  %p693_p4 = pneg %p692_p11  ;;  %p698_p10 = scmp.lt.s32.totalorder %s696_s10, %s690_s18 }
  0x65   : > { %v295_v14 = vmul.f32 1.442695, %v294_v10  ;;  %342 = vst [vmem:[%s258_s24] sm:$0x3] %v275_v39 }
  0x66   : > { %620 = vpow2.f32 %v277_v11  ;;  %p699_p12 = por %p698_p10, %p697_p7 }
  0x67   : > { %622 = vpow2.f32 %v283_v12 }
  0x68   : > { %624 = vpow2.f32 %v289_v13  ;;  %p700_p9 = pnand %p699_p12, %p693_p4 }
  0x69   : > { %626 = vpow2.f32 %v295_v14 }
  0x70   : > { %v621_v15 = vpop.eup %620 }
  0x71   : > { %v623_v16 = vpop.eup %622 }
  0x72   : > { %v625_v17 = vpop.eup %624  ;;  %v285_v18 = vadd.f32 %v623_v16, %v621_v15 }
  0x73   : > { %v627_v19 = vpop.eup %626 }
  0x74   : > { %v291_v20 = vadd.f32 %v625_v17, %v285_v18 }
  0x76   : > { %v297_v22 = vadd.f32 %v627_v19, %v291_v20 }
  0x78   : > { %628 = vlog2.f32 %v297_v22 }
  0x82   : > { %v629_v26 = vpop.eup %628 }
  0x83   : > { %v301_v27 = vmul.f32 0.6931472, %v629_v26 }
  0x85   : > { %v302_v29 = vadd.f32 %v301_v27, %v274_v6 }
  0x87   : > { %v303_v30 = vsub.f32 %v302_v29, %v299_v28 }
  0x89   : > { %v305_v31 = vsel %vm304_vm4, %v303_v30, 0.0 }
  0x8a   : > { %v307_v34 = vsel %vm306_vm5, %v305_v31, 0.0 }
  0x8b   : > { %308 = vadd.xlane.f32.xlu0 %v307_v34 }
  0x8f   : > { %320 = vadd.xlane.f32.xlu0 %v319_v35 }
  0x90   : > { %703 = shalt.err (!%p700_p9)
}
  0x91   : > { %s704_s5 = scalar_lea.hbm %s1010_s19, 32  ;;  %s708_s29 = scalar_lea.hbm %s1088_s3, 64 }
  0x92   : > { %p705_p1 = scmp.ne.s32.totalorder %s1010_s19, %s704_s5  ;;  %p709_p5 = scmp.lt.u32.totalorder %s1010_s19, %s1088_s3 }
  0x93   : > { %p710_p13 = scmp.lt.u32.totalorder %s708_s29, %s704_s5  ;;  %p712_p0 = scmp.lt.u32.totalorder %s704_s5, %s1010_s19 }
  0x94   : > { %p706_p6 = pnand %p705_p1, %p1100_p3 }
  0x95   : > { %p711_p8 = por %p710_p13, %p709_p5 }
  0x96   : > { %p707_p2 = pneg %p706_p6 }
  0x97   : > { %p713_p11 = por %p712_p0, %p711_p8 }
  0x99   : > { %p714_p4 = pnand %p713_p11, %p707_p2 }
  0x9b   : > { %717 = shalt.err (!%p714_p4)
}
  0x9c   : > { %549 = dma.vmem_to_hbm [thread:$0]  (%p1100_p3), %s378_s6, 32, %s1010_s19, %s349_s28   ;;  %v329_v54 = vlaneseq }
  0x9d   : > { %s535_s7 = sshll.u32 %s800_s15, 7  ;;  %s251_s19 = scalar_lea.vmem [#allocation7], %s525_s8 }
  0x9e   : > { %v332_v55 = vand.u32 127, %v329_v54  ;;  %v330_v56 = vshrl.u32 %v329_v54, 7  ;;  %s363_s28 = sshll.u32 %s251_s19, 4  ;;  %s1036_s23 = scalar_lea.hbm %s1087_s2, %s535_s7  ;;  %s1038_s28 = int_to_ptr.vmem [resolvable:$true] %s363_s28 }
  0x9f   : > { %s344_s15 = scalar_lea.sflag [#allocation4], %s986_s30  ;;  %s718_s8 = scalar_lea.vmem %s1038_s28, 128 }
  0xa0   : > { %vm334_vm9 = vcmp.eq.s32.totalorder %v332_v55, 1  ;;  %vm333_vm10 = vcmp.eq.s32.totalorder %v332_v55, 0  ;;  %vm339_vm11 = vcmp.eq.s32.totalorder %v330_v56, 0  ;;  %p719_p7 = scmp.ne.s32.totalorder %s1038_s28, %s718_s8  ;;  %s817_s10 = smov [#allocation7]  }
  0xa1   : > { %s722_s5 = sshll.u32 %s817_s10, 4  ;;  %s723_s5 = int_to_ptr.vmem [resolvable:$false] %s722_s5 }
  0xa2   : > { %p720_p10 = pnand %p719_p7, %p1100_p3  ;;  %s724_s9 = scalar_lea.vmem %s723_s5, 256 }
  0xa3   : > { %p725_p9 = scmp.lt.s32.totalorder %s1038_s28, %s723_s5  ;;  %p726_p1 = scmp.lt.s32.totalorder %s724_s9, %s718_s8 }
  0xa4   : > { %p721_p12 = pneg %p720_p10 }
  0xa5   : > { %p727_p6 = por %p726_p1, %p725_p9 }
  0xa7   : > { %p728_p2 = pnand %p727_p6, %p721_p12 }
 0x118   : > { %v309_v40 = vpop.xlane.xlu0 %308 }
 0x119   : > { %v310_v41 = vrot.slane %v309_v40, 4 }
 0x11b   : > { %v311_v42 = vadd.f32 %v310_v41, %v309_v40 }
 0x11c   : > { %v321_v43 = vpop.xlane.xlu0 %320 }
 0x11d   : > { %v312_v44 = vrot.slane %v311_v42, 2  ;;  %v322_v45 = vrot.slane %v321_v43, 4 }
 0x11f   : > { %v323_v46 = vadd.f32 %v322_v45, %v321_v43  ;;  %v313_v47 = vadd.f32 %v312_v44, %v311_v42 }
 0x121   : > { %v324_v48 = vrot.slane %v323_v46, 2  ;;  %v314_v49 = vrot.slane %v313_v47, 1 }
 0x123   : > { %v325_v50 = vadd.f32 %v324_v48, %v323_v46  ;;  %v315_v51 = vadd.f32 %v314_v49, %v313_v47 }
 0x125   : > { %540 = vpush %v315_v51  ;;  %v326_v52 = vrot.slane %v325_v50, 1 }
 0x127   : > { %v327_v53 = vadd.f32 %v326_v52, %v325_v50 }
 0x129   : > { %542 = vpush %v327_v53 }
 0x156   : > { %s541_s6 = spop %540 }
 0x157   : > { %v337_v58 = vstv %s541_s6 }
 0x15a   : > { %s543_s11 = spop %542 }
 0x15b   : > { %v335_v57 = vstv %s543_s11 }
 0x15c   : > { %v336_v59 = vsel %vm334_vm9, %v335_v57, 0.0 }
 0x15d   : > { %v338_v60 = vsel %vm333_vm10, %v337_v58, %v336_v59 }
 0x15e   : > { %v340_v61 = vsel %vm339_vm11, %v338_v60, 0.0 }
 0x15f   : > { %341 = vst [vmem:[%s251_s19] sm:$0xff] %v340_v61 }
 0x160   : > { %731 = shalt.err (!%p728_p2)
}
 0x161   : > { %s732_s30 = scalar_lea.hbm %s1036_s23, 128  ;;  %s736_s24 = scalar_lea.hbm %s1087_s2, 256 }
 0x162   : > { %p733_p5 = scmp.ne.s32.totalorder %s1036_s23, %s732_s30  ;;  %p737_p0 = scmp.lt.u32.totalorder %s1036_s23, %s1087_s2 }
 0x163   : > { %p738_p11 = scmp.lt.u32.totalorder %s736_s24, %s732_s30  ;;  %p740_p7 = scmp.lt.u32.totalorder %s732_s30, %s1036_s23 }
 0x164   : > { %p734_p13 = pnand %p733_p5, %p1100_p3 }
 0x165   : > { %p739_p4 = por %p738_p11, %p737_p0 }
 0x166   : > { %p735_p8 = pneg %p734_p13 }
 0x167   : > { %p741_p10 = por %p740_p7, %p739_p4 }
 0x169   : > { %p742_p12 = pnand %p741_p10, %p735_p8 }
 0x16b   : > { %745 = shalt.err (!%p742_p12)
}
 0x16c   : > { %548 = dma.vmem_to_hbm [thread:$0]  (%p1100_p3), %s1038_s28, 128, %s1036_s23, %s344_s15  }
 0x16d PF: > { %s389_s7 = sand.u32 1, %s788_s12   ;;  %p1101_p9 = scmp.ne.s32.totalorder %s1094_s27, 0 }
 0x16e   : > { %p1102_p1 = scmp.ge.s32.totalorder %s808_s17, 2  ;;  %s390_s11 = scalar_lea.sflag [#allocation4], %s389_s7 }
 0x170   : > { %p560_p6 = pnand %p1102_p1, %p1101_p9 }
 0x172   : > { %779 = dma.done.wait (!%p560_p6), %s390_s11, 128  }
 0x173   : > { %781 = vsyncadd (!%p560_p6), %s390_s11, 4294967168  ;;  %s399_s19 = scalar_lea.sflag [#allocation9], %s389_s7 }
 0x174   : > { %783 = dma.done.wait (!%p560_p6), %s399_s19, 32  }
 0x175   : > { %785 = vsyncadd (!%p560_p6), %s399_s19, 4294967264  ;;  %s26_s17 = sadd.s32 1, %s808_s17   ;;  %s1103_s12 = smov %s792_s13 }
 0x176   : > { %p23_p2 = scmp.ge.s32.totalorder %s26_s17, 4   ;;  %s1104_s13 = smov %s796_s14 }
 0x177   : > { %s1105_s14 = smov %s894_s26  ;;  %s1106_s15 = smov %s804_s16 }
 0x178   : > { %s1107_s16 = smov %s1109_s20  ;;  %25 = sbr.rel (!%p23_p2) target bundleno = 10 (0xa), region = 106 }
 0x17f   :  { %404 = vsyncpa [#allocation3], 1 }
 0x180   :  { %406 = vsyncpa [#allocation3 + $0x1], 1 }
 0x181   :  { %407 = vsyncpa [#allocation6], 1 }
 0x182   :  { %409 = vsyncpa [#allocation6 + $0x1], 1 }
 0x183   :  { %410 = vsyncpa [#allocation4], 1 }
 0x184   :  { %412 = vsyncpa [#allocation4 + $0x1], 1 }
 0x185   :  { %413 = vsyncpa [#allocation9], 1 }
 0x186   :  { %415 = vsyncpa [#allocation9 + $0x1], 1 }

</bundles_post_ra>
